<compile_context>
chip_gen: v7x
topology: tpu7x:2x2x1
jax: 0.10.0
libtpu: 0.0.40
codegen_flags: <defaults>
</compile_context>

<pallas_src>
import functools

import jax
import jax.numpy as jnp
from jax import lax
from jax.experimental import pallas as pl
from jax.experimental.pallas import tpu as pltpu


def _round_up(x, m):
    return ((x + m - 1) // m) * m


def _pick_tm(M, tm):
    """Row-tile choice: (8,128)-aligned, and >=2 grid steps along the parallel row axis
    when M allows it so both v7x TensorCores get work."""
    tm = min(tm, _round_up(M, 8))
    if M > 8 and _round_up(M, tm) // tm < 2:
        tm = _round_up(pl.cdiv(M, 2), 8)
    return tm


# ----------------------------- tiled linear (matmul + bias [+ relu] [+ residual]) ---------------

def _linear_kernel(x_ref, w_ref, b_ref, *refs, activation, nk, has_residual):
    if has_residual:
        r_ref, o_ref, acc_ref = refs
    else:
        o_ref, acc_ref = refs

    @pl.when(pl.program_id(2) == 0)
    def _():
        acc_ref[...] = jnp.zeros_like(acc_ref)

    # x and w tiles arrive already in bf16 (cast in wrapper / pre-cast weights).
    acc_ref[...] += jnp.dot(x_ref[...], w_ref[...], preferred_element_type=jnp.float32)

    @pl.when(pl.program_id(2) == nk - 1)
    def _():
        y = acc_ref[...] + b_ref[...]
        if activation == "relu":
            y = jnp.maximum(y, 0.0)
        if has_residual:
            y = y + r_ref[...]
        o_ref[...] = y.astype(o_ref.dtype)


def linear(x2d, w, b, activation=None, residual=None, out_dtype=jnp.float32,
           tm=512, tn=256, tk=512):
    """x2d: (M, K), w: (K, N) (bf16 pre-cast ok), b: (N,) f32, residual: optional (M, N) f32."""
    M, K = x2d.shape
    N = w.shape[1]
    tm = _pick_tm(M, tm)
    tk = min(tk, _round_up(K, 128))
    tn = min(tn, _round_up(N, 128))
    Mp, Kp, Np = _round_up(M, tm), _round_up(K, tk), _round_up(N, tn)

    x_bf = x2d.astype(jnp.bfloat16)                      # bf16 tiles into the MXU (half DMA bytes)
    x_p = x_bf if (Mp, Kp) == (M, K) else jnp.pad(x_bf, ((0, Mp - M), (0, Kp - K)))
    w_bf = w.astype(jnp.bfloat16)                        # no-op when weights are pre-cast
    w_p = w_bf if (Kp, Np) == (K, N) else jnp.pad(w_bf, ((0, Kp - K), (0, Np - N)))
    b_p = b if Np == N else jnp.pad(b, (0, Np - N))

    nk = Kp // tk
    in_specs = [pl.BlockSpec((tm, tk), lambda i, j, k: (i, k)),
                pl.BlockSpec((tk, tn), lambda i, j, k: (k, j)),
                pl.BlockSpec((1, tn), lambda i, j, k: (0, j))]
    args = [x_p, w_p, b_p.reshape(1, Np)]
    if residual is not None:
        r_p = residual if residual.shape == (Mp, Np) else jnp.pad(
            residual, ((0, Mp - M), (0, Np - N)))
        in_specs.append(pl.BlockSpec((tm, tn), lambda i, j, k: (i, j)))
        args.append(r_p)

    out = pl.pallas_call(
        functools.partial(_linear_kernel, activation=activation, nk=nk,
                          has_residual=residual is not None),
        grid=(Mp // tm, Np // tn, nk),
        in_specs=in_specs,
        out_specs=pl.BlockSpec((tm, tn), lambda i, j, k: (i, j)),
        out_shape=jax.ShapeDtypeStruct((Mp, Np), out_dtype),
        scratch_shapes=[pltpu.VMEM((tm, tn), jnp.float32)],
        compiler_params=pltpu.CompilerParams(
            dimension_semantics=("parallel", "parallel", "arbitrary")),
    )(*args)
    return out[:M, :N]


# ----------------------------- layernorm helper (torch-style: unbiased std, eps on std) ---------
# TODO(synk): the custom Norm class is not in the snippet; the common implementation
# alpha*(x-mean)/(x.std(-1)+eps)+bias (unbiased std, eps added to std) is assumed.

def _layernorm_stats(x, alpha, beta, eps):
    mean = jnp.mean(x, axis=-1, keepdims=True)
    d = x - mean
    n = x.shape[-1]
    var = jnp.sum(d * d, axis=-1, keepdims=True) / (n - 1)   # torch .std(-1): unbiased
    return alpha * d / (jnp.sqrt(var) + eps) + beta


# ----------------------------- fused LayerNorm + linear (QKV projection / output head) ----------

def _ln_linear_kernel(x_ref, a_ref, b_ref, w_ref, bias_ref, o_ref, *, eps):
    xn = _layernorm_stats(x_ref[...], a_ref[...], b_ref[...], eps)
    y = jnp.dot(xn.astype(jnp.bfloat16), w_ref[...],
                preferred_element_type=jnp.float32) + bias_ref[...]
    o_ref[...] = y.astype(o_ref.dtype)


def ln_linear(x2d, alpha, beta, w, b, eps=1e-6, out_dtype=jnp.float32, tm=256):
    """layernorm(x) @ w + b; w kept whole in VMEM (bf16).  At large d_model use
    pipeline_mode=pl.Buffered(1) on the constant-index weight spec / raise vmem_limit_bytes."""
    M, D = x2d.shape
    N = w.shape[1]
    tm = _pick_tm(M, tm)
    Mp = _round_up(M, tm)
    x_p = x2d if Mp == M else jnp.pad(x2d, ((0, Mp - M), (0, 0)))
    out = pl.pallas_call(
        functools.partial(_ln_linear_kernel, eps=eps),
        grid=(Mp // tm,),
        in_specs=[pl.BlockSpec((tm, D), lambda i: (i, 0)),
                  pl.BlockSpec((1, D), lambda i: (0, 0)),
                  pl.BlockSpec((1, D), lambda i: (0, 0)),
                  pl.BlockSpec((D, N), lambda i: (0, 0)),
                  pl.BlockSpec((1, N), lambda i: (0, 0))],
        out_specs=pl.BlockSpec((tm, N), lambda i: (i, 0)),
        out_shape=jax.ShapeDtypeStruct((Mp, N), out_dtype),
        compiler_params=pltpu.CompilerParams(dimension_semantics=("parallel",)),
    )(x_p, alpha.reshape(1, D), beta.reshape(1, D),
      w.astype(jnp.bfloat16), b.reshape(1, N))
    return out[:M]


# ----------------------------- fused FF sublayer: LN -> W1+ReLU -> W2 -> residual ---------------

def _ln_ff_kernel(x_ref, a_ref, b_ref, w1_ref, b1_ref, w2_ref, b2_ref, o_ref, *, eps):
    x = x_ref[...]
    xn = _layernorm_stats(x, a_ref[...], b_ref[...], eps)
    h = jnp.dot(xn.astype(jnp.bfloat16), w1_ref[...],
                preferred_element_type=jnp.float32) + b1_ref[...]
    h = jnp.maximum(h, 0.0)                                  # (tm, d_ff) stays in VMEM
    y = jnp.dot(h.astype(jnp.bfloat16), w2_ref[...],
                preferred_element_type=jnp.float32) + b2_ref[...]
    o_ref[...] = x + y                                       # fused residual add


def ln_ff(x2d, alpha, beta, w1, b1, w2, b2, eps=1e-6, tm=256):
    M, D = x2d.shape
    F = w1.shape[1]
    tm = _pick_tm(M, tm)
    Mp = _round_up(M, tm)
    x_p = x2d if Mp == M else jnp.pad(x2d, ((0, Mp - M), (0, 0)))
    out = pl.pallas_call(
        functools.partial(_ln_ff_kernel, eps=eps),
        grid=(Mp // tm,),
        in_specs=[pl.BlockSpec((tm, D), lambda i: (i, 0)),
                  pl.BlockSpec((1, D), lambda i: (0, 0)),
                  pl.BlockSpec((1, D), lambda i: (0, 0)),
                  pl.BlockSpec((D, F), lambda i: (0, 0)),
                  pl.BlockSpec((1, F), lambda i: (0, 0)),
                  pl.BlockSpec((F, D), lambda i: (0, 0)),
                  pl.BlockSpec((1, D), lambda i: (0, 0))],
        out_specs=pl.BlockSpec((tm, D), lambda i: (i, 0)),
        out_shape=jax.ShapeDtypeStruct((Mp, D), jnp.float32),
        compiler_params=pltpu.CompilerParams(dimension_semantics=("parallel",)),
    )(x_p, alpha.reshape(1, D), beta.reshape(1, D),
      w1.astype(jnp.bfloat16), b1.reshape(1, F),
      w2.astype(jnp.bfloat16), b2.reshape(1, D))
    return out[:M]


# ----------------------------- per-batch multi-head attention -----------------------------------

def _attn_kernel(qkv_ref, bias_ref, o_ref, *, heads, dk, d_model, scale):
    qkv = qkv_ref[0]                                 # (S, 3*d_model) bf16, lane-dense load
    m = bias_ref[0]                                  # (S, S) f32 additive mask: 0 keep, -1e9 masked
    for h in range(heads):                           # heads is a small static int
        lo, hi = h * dk, (h + 1) * dk
        qh = qkv[:, lo:hi]
        kh = qkv[:, d_model + lo:d_model + hi]
        vh = qkv[:, 2 * d_model + lo:2 * d_model + hi]
        # contract last axes directly (no XLU kh.T transpose)
        s = lax.dot_general(qh, kh, (((1,), (1,)), ((), ())),
                            preferred_element_type=jnp.float32) * scale + m
        s = s - jnp.max(s, axis=-1, keepdims=True)
        p = jnp.exp(s)
        p = p * pl.reciprocal(jnp.sum(p, axis=-1, keepdims=True), approx=True)
        ctx = jnp.dot(p.astype(jnp.bfloat16), vh, preferred_element_type=jnp.float32)
        o_ref[0, :, lo:hi] = ctx.astype(o_ref.dtype)          # per-head store, no concat


def attention(qkv, attn_bias, heads):
    """qkv: (B, S, 3*d_model) bf16, attn_bias: (1 or B, S, S) f32 additive -> (B, S, d_model) bf16."""
    B, S, three_dm = qkv.shape
    d_model = three_dm // 3
    dk = d_model // heads
    scale = 1.0 / float(dk) ** 0.5
    shared_bias = attn_bias.shape[0] == 1
    bias_map = (lambda b: (0, 0, 0)) if shared_bias else (lambda b: (b, 0, 0))
    return pl.pallas_call(
        functools.partial(_attn_kernel, heads=heads, dk=dk, d_model=d_model, scale=scale),
        grid=(B,),
        in_specs=[pl.BlockSpec((1, S, three_dm), lambda b: (b, 0, 0)),
                  pl.BlockSpec((1, S, S), bias_map)],
        out_specs=pl.BlockSpec((1, S, d_model), lambda b: (b, 0, 0)),
        out_shape=jax.ShapeDtypeStruct((B, S, d_model), jnp.bfloat16),
        compiler_params=pltpu.CompilerParams(dimension_semantics=("parallel",)),
    )(qkv, attn_bias)


# ----------------------------- parameters (pre-packed, pre-cast bf16 weights) -------------------

def init_params(key, trg_vocab, d_model, N, d_ff, img_dim, max_len=1024):
    keys = jax.random.split(key, 8)

    def dense(k, din, dout):
        return (jax.random.normal(k, (din, dout), jnp.float32) * 0.02,
                jnp.zeros((dout,), jnp.float32))

    p = {}
    tu_w, p["tu_b"] = dense(keys[0], img_dim, d_model)                       # 图转
    p["tu_w"] = tu_w.astype(jnp.bfloat16)
    p["embedP"] = jax.random.normal(keys[1], (max_len, d_model), jnp.float32) * 0.02
    p["embedX"] = jax.random.normal(keys[2], (trg_vocab, d_model), jnp.float32) * 0.02

    lk = jax.random.split(keys[3], 6)
    wq, bq = dense(lk[0], d_model, d_model)
    wk, bk = dense(lk[1], d_model, d_model)
    wv, bv = dense(lk[2], d_model, d_model)
    wo, bo = dense(lk[3], d_model, d_model)
    w1, b1 = dense(lk[4], d_model, d_ff)
    w2, b2 = dense(lk[5], d_ff, d_model)
    layer = {
        "n1_a": jnp.ones((d_model,), jnp.float32), "n1_b": jnp.zeros((d_model,), jnp.float32),
        "n2_a": jnp.ones((d_model,), jnp.float32), "n2_b": jnp.zeros((d_model,), jnp.float32),
        # weights packed + cast ONCE here, not per forward call
        "wqkv": jnp.concatenate([wq, wk, wv], axis=1).astype(jnp.bfloat16),
        "bqkv": jnp.concatenate([bq, bk, bv]),
        "wo": wo.astype(jnp.bfloat16), "bo": bo,
        "w1": w1.astype(jnp.bfloat16), "b1": b1,
        "w2": w2.astype(jnp.bfloat16), "b2": b2,
    }
    # get_clones() deep-copies one initialized layer N times -> identical params
    p["layers"] = [dict(layer) for _ in range(N)]

    p["norm_a"] = jnp.ones((d_model,), jnp.float32)
    p["norm_b"] = jnp.zeros((d_model,), jnp.float32)
    outX_w, outX_b = dense(keys[4], d_model, trg_vocab)                      # outX
    val_w, val_b = dense(keys[5], d_model, 1)                                # 评价
    # fused [logits | value] head: one lane-dense projection, sliced afterwards
    p["head_w"] = jnp.concatenate([outX_w, val_w], axis=1).astype(jnp.bfloat16)
    p["head_b"] = jnp.concatenate([outX_b, val_b])
    return p


# ----------------------------- forward pass -----------------------------------------------------

def transformer_forward(params, tu_xiangliang, caozuo, trg_mask, heads,
                        include_zero_embed=False):
    B, S, img_dim = tu_xiangliang.shape
    d_model = params["embedP"].shape[1]

    # 图转: Linear(img_dim -> d_model)
    x = linear(tu_xiangliang.reshape(B * S, img_dim),
               params["tu_w"], params["tu_b"]).reshape(B, S, d_model)

    # x = 图向量 + embedP(position) (+ embedX(操作) * 0, skipped by default: exact no-op for
    # finite weights).  TODO(synk): Embedder definition not in snippet; plain lookup assumed.
    x = x + params["embedP"][:S][None, :, :]
    if include_zero_embed:
        x = x + jnp.take(params["embedX"], caozuo, axis=0) * 0.0

    # Additive attention bias computed once: 0 where mask==1, -1e9 where mask==0.
    # A (S,S) or (1,S,S) mask is kept shared across batch (no (B,S,S) materialisation).
    # Note: a fully-masked row would yield a uniform (not zero) softmax row.
    mask = trg_mask if trg_mask.ndim == 3 else trg_mask[None]
    attn_bias = (mask.astype(jnp.float32) - 1.0) * 1e9

    x2d = x.reshape(B * S, d_model)                  # f32 residual stream
    for layer in params["layers"]:
        # --- self-attention sublayer: fused LN + QKV (bf16 out), per-batch MHA (bf16 out),
        #     fused out-proj + residual ---
        qkv = ln_linear(x2d, layer["n1_a"], layer["n1_b"], layer["wqkv"], layer["bqkv"],
                        out_dtype=jnp.bfloat16)                              # (B*S, 3*d_model) bf16
        a = attention(qkv.reshape(B, S, 3 * d_model), attn_bias, heads)      # (B, S, d_model) bf16
        x2d = linear(a.reshape(B * S, d_model), layer["wo"], layer["bo"],
                     residual=x2d)                                           # x + Wo(attn), f32

        # --- feed-forward sublayer: fused LN -> W1+ReLU -> W2 -> residual ---
        x2d = ln_ff(x2d, layer["n2_a"], layer["n2_b"],
                    layer["w1"], layer["b1"], layer["w2"], layer["b2"])

    # fused final Norm + [outX | 评价] head: xn is read once, single lane-dense output slab
    head = ln_linear(x2d, params["norm_a"], params["norm_b"],
                     params["head_w"], params["head_b"])
    V = params["head_w"].shape[1] - 1
    output = head[:, :V].reshape(B, S, V)
    value = head[:, V:].reshape(B, S, 1)
    return output, value


# ----------------------------- main --------------------------------------------------------------

if __name__ == "__main__":
    B, S = 2, 8
    d_model, heads, N_layers, trg_vocab = 32, 4, 2, 16
    img_dim = 128          # stand-in for 图向量尺寸 = 6*6*2048 at small scale
    d_ff = 64              # TODO(synk): FeedForward hidden size not in snippet; 2*d_model used.

    key = jax.random.PRNGKey(0)
    kp, kx, ko = jax.random.split(key, 3)
    params = init_params(kp, trg_vocab, d_model, N_layers, d_ff, img_dim)

    tu_xiangliang = jax.random.normal(kx, (B, S, img_dim), dtype=jnp.float32)   # 图向量
    caozuo = jax.random.randint(ko, (B, S), 0, trg_vocab, dtype=jnp.int32)      # 操作
    trg_mask = jnp.tril(jnp.ones((S, S), dtype=jnp.float32))[None]              # (1,S,S) causal

    out, val = transformer_forward(params, tu_xiangliang, caozuo, trg_mask, heads)
    jax.block_until_ready((out, val))
    assert out.shape == (B, S, trg_vocab) and out.dtype == jnp.float32
    assert val.shape == (B, S, 1) and val.dtype == jnp.float32
    assert bool(jnp.all(jnp.isfinite(out))) and bool(jnp.all(jnp.isfinite(val)))
    print("KERNEL_OK")
</pallas_src>

<mosaic_0001>
module attributes {stable_mosaic.version = 11 : i64} {
  func.func @_linear_kernel(%arg0: i32, %arg1: i32, %arg2: i32, %arg3: memref<8x128xbf16, #tpu.memory_space<vmem>>, %arg4: memref<128x128xbf16, #tpu.memory_space<vmem>>, %arg5: memref<1x128xf32, #tpu.memory_space<vmem>>, %arg6: memref<8x128xf32, #tpu.memory_space<vmem>>, %arg7: memref<8x128xf32, #tpu.memory_space<vmem>>) attributes {dimension_semantics = [#tpu.dimension_semantics<parallel>, #tpu.dimension_semantics<parallel>, #tpu.dimension_semantics<arbitrary>], iteration_bounds = array<i64: 2, 1, 1>, scalar_prefetch = 0 : i64, scratch_operands = 1 : i64, tpu.core_type = #tpu.core_type<tc>, window_params = [{transform_indices = @transform_0, window_bounds = array<i64: 8, 128>}, {transform_indices = @transform_1, window_bounds = array<i64: 128, 128>}, {transform_indices = @transform_2, window_bounds = array<i64: 1, 128>}, {transform_indices = @transform_3, window_bounds = array<i64: 8, 128>}]} {
    %c0_i32 = arith.constant 0 : i32
    %0 = arith.cmpi eq, %arg2, %c0_i32 : i32
    %1 = arith.extui %0 : i1 to i32
    %c0_i32_0 = arith.constant 0 : i32
    %2 = arith.cmpi ne, %1, %c0_i32_0 : i32
    scf.if %2 {
      %cst_10 = arith.constant 0.000000e+00 : f32
      %12 = vector.broadcast %cst_10 : f32 to vector<8x128xf32>
      %c0_11 = arith.constant 0 : index
      %c0_12 = arith.constant 0 : index
      %13 = vector.load %arg7[%c0_11, %c0_12] : memref<8x128xf32, #tpu.memory_space<vmem>>, vector<8x128xf32>
      tpu.vector_store %arg7[%c0_11, %c0_12], %12 {strides = array<i32>} : memref<8x128xf32, #tpu.memory_space<vmem>>, vector<8x128xf32>,
    } else {
    }
    %c0 = arith.constant 0 : index
    %c0_1 = arith.constant 0 : index
    %3 = vector.load %arg7[%c0, %c0_1] : memref<8x128xf32, #tpu.memory_space<vmem>>, vector<8x128xf32>
    %c0_2 = arith.constant 0 : index
    %c0_3 = arith.constant 0 : index
    %4 = vector.load %arg3[%c0_2, %c0_3] : memref<8x128xbf16, #tpu.memory_space<vmem>>, vector<8x128xbf16>
    %c0_4 = arith.constant 0 : index
    %c0_5 = arith.constant 0 : index
    %5 = vector.load %arg4[%c0_4, %c0_5] : memref<128x128xbf16, #tpu.memory_space<vmem>>, vector<128x128xbf16>
    %cst = arith.constant dense<0.000000e+00> : vector<8x128xf32>
    %6 = tpu.matmul %4, %5, %cst {dimension_numbers = #tpu.dot_dimension_numbers<[1], [0], [0], [1], [0, 0, 1, 1], [], []>} : vector<8x128xbf16>, vector<128x128xbf16>, vector<8x128xf32> -> vector<8x128xf32>
    %7 = arith.addf %3, %6 : vector<8x128xf32>
    %c0_6 = arith.constant 0 : index
    %c0_7 = arith.constant 0 : index
    %8 = vector.load %arg7[%c0_6, %c0_7] : memref<8x128xf32, #tpu.memory_space<vmem>>, vector<8x128xf32>
    tpu.vector_store %arg7[%c0_6, %c0_7], %7 {strides = array<i32>} : memref<8x128xf32, #tpu.memory_space<vmem>>, vector<8x128xf32>,
    %c0_i32_8 = arith.constant 0 : i32
    %9 = arith.cmpi eq, %arg2, %c0_i32_8 : i32
    %10 = arith.extui %9 : i1 to i32
    %c0_i32_9 = arith.constant 0 : i32
    %11 = arith.cmpi ne, %10, %c0_i32_9 : i32
    scf.if %11 {
      %c0_10 = arith.constant 0 : index
      %c0_11 = arith.constant 0 : index
      %12 = vector.load %arg7[%c0_10, %c0_11] : memref<8x128xf32, #tpu.memory_space<vmem>>, vector<8x128xf32>
      %c0_12 = arith.constant 0 : index
      %c0_13 = arith.constant 0 : index
      %13 = vector.load %arg5[%c0_12, %c0_13] : memref<1x128xf32, #tpu.memory_space<vmem>>, vector<1x128xf32>
      %14 = vector.broadcast %13 : vector<1x128xf32> to vector<8x128xf32>
      %15 = arith.addf %12, %14 : vector<8x128xf32>
      %c0_14 = arith.constant 0 : index
      %c0_15 = arith.constant 0 : index
      %16 = vector.load %arg6[%c0_14, %c0_15] : memref<8x128xf32, #tpu.memory_space<vmem>>, vector<8x128xf32>
      tpu.vector_store %arg6[%c0_14, %c0_15], %15 {strides = array<i32>} : memref<8x128xf32, #tpu.memory_space<vmem>>, vector<8x128xf32>,
    } else {
    }
    return
  }
  func.func @transform_0(%arg0: i32, %arg1: i32, %arg2: i32) -> (i32, i32) {
    %c0_i32 = arith.constant 0 : i32
    return %arg0, %arg2 : i32, i32
  }
  func.func @transform_1(%arg0: i32, %arg1: i32, %arg2: i32) -> (i32, i32) {
    %c0_i32 = arith.constant 0 : i32
    return %arg2, %arg1 : i32, i32
  }
  func.func @transform_2(%arg0: i32, %arg1: i32, %arg2: i32) -> (i32, i32) {
    %c0_i32 = arith.constant 0 : i32
    %c0_i32_0 = arith.constant 0 : i32
    return %c0_i32, %arg1 : i32, i32
  }
  func.func @transform_3(%arg0: i32, %arg1: i32, %arg2: i32) -> (i32, i32) {
    %c0_i32 = arith.constant 0 : i32
    return %arg0, %arg1 : i32, i32
  }
}

</mosaic_0001>

<bundles_post_ra>
// kernel: tpu_custom_call.1
= control target key start
LH: loop header
LB: loop body
LE: loop exit
PB: predicated region body
PF: predicated region fallthrough
CT: control target
= control target key end

     0   :  { %8 = vsyncpa [#allocation4], 0  ;;  %s1035_s0 = inlined_call_operand.hbm [shape: bf16[16,128], index: 0, kind: input, shape index: {}]   ;;  %s1036_s1 = inlined_call_operand.hbm [shape: bf16[128,128], index: 1, kind: input, shape index: {}]   ;;  %s1037_s2 = inlined_call_operand.vmem [shape: f32[1,128], index: 2, kind: input, shape index: {}]   ;;  %s1038_s3 = inlined_call_operand.hbm [shape: f32[16,128], index: 3, kind: output, shape index: {}]  }
   0x1   :  { %10 = vsyncpa [#allocation4 + $0x1], 0 }
   0x2   :  { %11 = vsyncpa [#allocation7], 0 }
   0x3   :  { %12 = vsyncpa [#allocation5], 0 }
   0x4   :  { %14 = vsyncpa [#allocation5 + $0x1], 0  ;;  %s814_s12 = smov 0   ;;  %s816_s13 = smov 0  }
   0x5   :  { %s818_s14 = smov 0   ;;  %s820_s15 = smov 0  }
   0x6   :  { %s822_s16 = smov 0   ;;  %s824_s17 = smov 0  }
   0x7 LB: > { %s502_s18 = sadd.s32 4294967295, %s785_s17   ;;  %s503_s19 = sadd.s32 4294967294, %s785_s17   ;;  %s785_s17 = sphi %s824_s17, %s20_s17   ;;  %s781_s16 = sphi %s822_s16, %s1062_s16   ;;  %s777_s15 = sphi %s820_s15, %s1061_s15   ;;  %s773_s14 = sphi %s818_s14, %s1060_s14   ;;  %s769_s13 = sphi %s816_s13, %s1059_s13   ;;  %s765_s12 = sphi %s814_s12, %s1058_s12  }
   0x8   : > { %p61_p0 = scmp.ne.s32.totalorder %s769_s13, %s765_s12  ;;  %p848_p1 = scmp.eq.s32.totalorder %s502_s18, 0 }
   0x9   : > { %p852_p2 = scmp.eq.s32.totalorder %s502_s18, 1  ;;  %p147_p3 = scmp.eq.s32.totalorder %s503_s19, 1 }
   0xa   : > { %s1043_s20 = scalar_select %p848_p1, 1, 0 }
   0xb   : > { %s1044_s21 = scalar_select %p852_p2, 1, 0 }
   0xc   : > { %p858_p4 = por %p848_p1, %p61_p0  ;;  %p504_p5 = scmp.ge.s32.totalorder %s785_s17, 1 }
   0xd   : > { %p863_p6 = por %p147_p3, %p61_p0  ;;  %p154_p7 = scmp.lt.s32.totalorder %s785_s17, 3 }
   0xe   : > { %s1045_s22 = scalar_select %p858_p4, 1, 0 }
   0xf   : > { %s1046_s23 = scalar_select %p863_p6, 1, 0 }
  0x10   : > { %p868_p8 = pnand %p504_p5, %p154_p7  ;;  %s787_s25 = smov [#allocation6]  }
  0x11   : > { %s170_s26 = sshll.u32 %s787_s25, 4  ;;  %s39_s28 = sadd.s32 1, %s781_s16  ;;  %s171_s26 = int_to_ptr.vmem [resolvable:$true] %s170_s26 }
  0x12   : > { %s1047_s24 = scalar_select %p868_p8, 1, 0 }
  0x13   : > { %p564_p9 = pneg %p868_p8  ;;  %s641_s4 = scalar_lea.hbm %s1036_s1, 1024 }
  0x14   : > { %p642_p12 = scmp.ne.s32.totalorder %s1036_s1, %s641_s4  ;;  %p648_p5 = scmp.lt.u32.totalorder %s641_s4, %s1036_s1 }
  0x15   : > { %p877_p11 = pnand %p564_p9, %p848_p1 }
  0x17   : > { %p643_p13 = pneg %p877_p11 }
  0x19   : > { %p644_p0 = pnand %p643_p13, %p642_p12 }
  0x1b   : > { %p645_p3 = pneg %p644_p0 }
  0x1d   : > { %p650_p7 = pnand %p648_p5, %p645_p3 }
  0x1f   : > { %653 = shalt.err (!%p650_p7)
}
  0x20   : > { %s654_s9 = scalar_lea.vmem %s171_s26, 1024  ;;  %p662_p1 = scmp.lt.s32.totalorder %s171_s26, %s171_s26 }
  0x21   : > { %p655_p9 = scmp.ne.s32.totalorder %s171_s26, %s654_s9  ;;  %p663_p4 = scmp.lt.s32.totalorder %s654_s9, %s654_s9 }
  0x23   : > { %p657_p10 = pnand %p655_p9, %p643_p13  ;;  %p664_p8 = por %p663_p4, %p662_p1 }
  0x25   : > { %p658_p6 = pneg %p657_p10 }
  0x27   : > { %p665_p2 = pnand %p664_p8, %p658_p6 }
  0x29   : > { %668 = shalt.err (!%p665_p2)
}
  0x2a   : > { %s788_s10 = smov 64   ;;  %s789_s11 = smov 4  }
  0x2b   : > { %567 = dma.hbm_to_vmem [thread:$0]  (!%p877_p11), %s1036_s1, 1024, %s171_s26, [#allocation7], %s788_s10, %s788_s10, %s789_s11  }
  0x2c   : > { %p41_p1 = scmp.ge.s32.totalorder %s39_s28, 2  ;;  %s48_s25 = sadd.s32 1, %s773_s14 }
  0x2d   : > { %p55_p2 = scmp.ne.s32.totalorder %s773_s14, %s769_s13  ;;  %p56_p4 = scmp.eq.s32.totalorder %s785_s17, 0 }
  0x2e   : > { %s1064_s28 = smov (%p41_p1, %s39_s28), 0  ;;  %p1050_p8 = scmp.ne.s32.totalorder %s1044_s21, 0 }
  0x2f   : > { %p904_p6 = por %p56_p4, %p55_p2  ;;  %s43_s27 = ssub.s32 %s781_s16, %s1064_s28 }
  0x30   : > { %p910_p10 = por %p1050_p8, %p55_p2  ;;  %p577_p12 = scmp.lt.s32.totalorder %s785_s17, 2 }
  0x31   : > { %p46_p11 = scmp.eq.s32.totalorder %s43_s27, 0  ;;  %s190_s26 = sand.u32 1, %s773_s14  }
  0x32   : > { %s508_s4 = sshll.u32 %s190_s26, 2  ;;  %s509_s6 = sshll.u32 %s781_s16, 6 }
  0x33   : > { %s919_s5 = scalar_select %p46_p11, %s773_s14, %s48_s25  }
  0x34   : > { %s925_s9 = scalar_lea.hbm %s1035_s0, %s509_s6  ;;  %s194_s21 = scalar_lea.vmem [#allocation3], %s508_s4 }
  0x35   : > { %s202_s10 = sshll.u32 %s194_s21, 4  ;;  %p931_p13 = pnand %p577_p12, %p904_p6  ;;  %s927_s10 = int_to_ptr.vmem [resolvable:$true] %s202_s10 }
  0x36   : > { %s191_s18 = scalar_lea.sflag [#allocation4], %s190_s26  ;;  %s669_s19 = scalar_lea.hbm %s925_s9, 64 }
  0x37   : > { %p670_p0 = scmp.ne.s32.totalorder %s925_s9, %s669_s19  ;;  %p671_p3 = pneg %p931_p13 }
  0x38   : > { %s674_s4 = scalar_lea.hbm %s1035_s0, 128  ;;  %p675_p9 = scmp.lt.u32.totalorder %s925_s9, %s1035_s0 }
  0x39   : > { %p672_p5 = pnand %p671_p3, %p670_p0  ;;  %p676_p1 = scmp.lt.u32.totalorder %s674_s4, %s669_s19 }
  0x3a   : > { %p678_p4 = scmp.lt.u32.totalorder %s669_s19, %s925_s9 }
  0x3b   : > { %p673_p7 = pneg %p672_p5  ;;  %p677_p2 = por %p676_p1, %p675_p9 }
  0x3d   : > { %p679_p6 = por %p678_p4, %p677_p2 }
  0x3f   : > { %p680_p8 = pnand %p679_p6, %p673_p7 }
  0x41   : > { %683 = shalt.err (!%p680_p8)
}
  0x42   : > { %s684_s26 = scalar_lea.vmem %s927_s10, 64  ;;  %s790_s7 = smov [#allocation3]  }
  0x43   : > { %p685_p12 = scmp.ne.s32.totalorder %s927_s10, %s684_s26  ;;  %s689_s8 = sshll.u32 %s790_s7, 4  ;;  %s690_s8 = int_to_ptr.vmem [resolvable:$false] %s689_s8 }
  0x44   : > { %s691_s21 = scalar_lea.vmem %s690_s8, 128  ;;  %p692_p5 = scmp.lt.s32.totalorder %s927_s10, %s690_s8 }
  0x45   : > { %p687_p11 = pnand %p685_p12, %p671_p3  ;;  %p693_p9 = scmp.lt.s32.totalorder %s691_s21, %s684_s26 }
  0x47   : > { %p688_p0 = pneg %p687_p11  ;;  %p694_p1 = por %p693_p9, %p692_p5 }
  0x49   : > { %p695_p2 = pnand %p694_p1, %p688_p0 }
  0x4b   : > { %698 = shalt.err (!%p695_p2)
}
  0x4c   : > { %571 = dma.hbm_to_vmem [thread:$0]  (!%p931_p13), %s925_s9, 64, %s927_s10, %s191_s18  }
  0x4d   : > { %p1053_p7 = scmp.ne.s32.totalorder %s1047_s24, 0 }
  0x4e   : > { %s963_s19 = sand.u32 (!%p1053_p7), 1, %s769_s13   ;;  %p1054_p3 = scmp.ne.s32.totalorder (!%p1053_p7), %s1045_s22, 0 }
  0x4f   : > { %211 = sbr.rel (%p1053_p7) target bundleno = 351 (0x15f), region = 32  ;;  %s511_s25 = sshll.u32 (!%p1053_p7), %s963_s19, 2 }
  0x50   : > { %s214_s27 = scalar_lea.sflag (!%p1053_p7), [#allocation4], %s963_s19  ;;  %s967_s4 = scalar_lea.vmem (!%p1053_p7), [#allocation3], %s511_s25 }
  0x56   : > { %752 = dma.done.wait (%p1054_p3), %s214_s27, 64  }
  0x57   : > { %754 = vsyncadd (%p1054_p3), %s214_s27, 4294967232  ;;  %p1055_p13 = scmp.ne.s32.totalorder %s1043_s20, 0 }
  0x59   : > { %756 = dma.done.wait (%p1055_p13), [#allocation7], 1024  }
  0x5a   : > { %758 = vsyncadd (%p1055_p13), [#allocation7], 4294966272  ;;  %v791_v0 = vmov 0.0   ;;  %vm792_vm0 = vmmov 0   ;;  %v633_v1 = vld [vmem:[#allocation6] sm:$0xff]   ;;  %v634_v2 = vld [vmem:[#allocation6 + $0x8] sm:$0xff]  }
  0x5b   : > { %536 = vmatprep.subr.bf16.mxu0 %v791_v0  ;;  %552 = vmatprep.mubr.msk.bf16.mxu0 %vm792_vm0, %v791_v0  ;;  %v635_v3 = vld [vmem:[#allocation6 + $0x10] sm:$0xff]   ;;  %v636_v4 = vld [vmem:[#allocation6 + $0x18] sm:$0xff]   ;;  %v637_v5 = vld [vmem:[#allocation6 + $0x20] sm:$0xff]   ;;  %s513_s20 = sshll.u32 %s963_s19, 3  ;;  %s524_s9 = sshll.u32 %s777_s15, 7 }
  0x5c   : > { %537 = vmatpush3.bf16.msra.mxu0 %v633_v1  ;;  %v638_v6 = vld [vmem:[#allocation6 + $0x28] sm:$0xff]   ;;  %v639_v7 = vld [vmem:[#allocation6 + $0x30] sm:$0xff]   ;;  %v640_v8 = vld [vmem:[#allocation6 + $0x38] sm:$0xff]   ;;  %s246_s10 = scalar_lea.vmem [#allocation8], %s513_s20  ;;  %s986_s6 = scalar_lea.hbm %s1038_s3, %s524_s9 }
  0x5d   : > { %538 = vmatprep.subr.bf16.mxu0 %v791_v0  ;;  %v258_v9 = vld [vmem:[%s967_s4] sm:$0xf]  ;;  %s393_s11 = sshll.u32 %s246_s10, 4  ;;  %s379_s26 = scalar_lea.sflag [#allocation5], %s963_s19  ;;  %s988_s11 = int_to_ptr.vmem [resolvable:$true] %s393_s11 }
  0x5e   : > { %v522_v10 = vld [vmem:[%s1037_s2] ss:$0 sm:$0xff]  ;;  %s699_s15 = scalar_lea.vmem %s988_s11, 128  ;;  %s793_s7 = smov [#allocation8]  }
  0x5f   : > { %p700_p4 = scmp.ne.s32.totalorder %s988_s11, %s699_s15  ;;  %s703_s8 = sshll.u32 %s793_s7, 4  ;;  %s704_s8 = int_to_ptr.vmem [resolvable:$false] %s703_s8 }
  0x60   : > { %539 = vmatpush3.bf16.msra.mxu0 %v634_v2  ;;  %s705_s21 = scalar_lea.vmem %s704_s8, 256  ;;  %p706_p12 = scmp.lt.s32.totalorder %s988_s11, %s704_s8 }
  0x61   : > { %540 = vmatprep.subr.bf16.mxu0 %v791_v0  ;;  %p701_p6 = pnand %p700_p4, %p910_p10  ;;  %p707_p11 = scmp.lt.s32.totalorder %s705_s21, %s699_s15 }
  0x63   : > { %p702_p8 = pneg %p701_p6  ;;  %p708_p0 = por %p707_p11, %p706_p12 }
  0x64   : > { %541 = vmatpush3.bf16.msra.mxu0 %v635_v3 }
  0x65   : > { %542 = vmatprep.subr.bf16.mxu0 %v791_v0  ;;  %p709_p5 = pnand %p708_p0, %p702_p8 }
  0x68   : > { %543 = vmatpush3.bf16.msra.mxu0 %v636_v4 }
  0x69   : > { %544 = vmatprep.subr.bf16.mxu0 %v791_v0 }
  0x6c   : > { %545 = vmatpush3.bf16.msra.mxu0 %v637_v5 }
  0x6d   : > { %546 = vmatprep.subr.bf16.mxu0 %v791_v0 }
  0x70   : > { %547 = vmatpush3.bf16.msra.mxu0 %v638_v6 }
  0x71   : > { %548 = vmatprep.subr.bf16.mxu0 %v791_v0 }
  0x74   : > { %549 = vmatpush3.bf16.msra.mxu0 %v639_v7 }
  0x75   : > { %550 = vmatprep.subr.bf16.mxu0 %v791_v0 }
  0x78   : > { %551 = vmatpush3.bf16.msra.mxu0 %v640_v8 }
  0x7b   : > { %553 = vmatmul.mubr.bf16.vlgmr.msra.gmra.mrb[0].mxu0 %v258_v9 }
 0x14e   : > { %v357_v11 = vpop.f32.mrb[0].mxu0 }
 0x14f   : > { %v376_v12 = vadd.f32 %v522_v10, %v357_v11  ;;  %v554_v13 = vpop.f32.mrb[1].mxu0 }
 0x150   : > { %v360_v14 = vpop.f32.mrb[2].mxu0 }
 0x151   : > { %377 = vst [vmem:[%s246_s10] sm:$0xff] %v376_v12  ;;  %v555_v15 = vpop.f32.mrb[3].mxu0 }
 0x152   : > { %712 = shalt.err (!%p709_p5)
}
 0x153   : > { %s713_s19 = scalar_lea.hbm %s986_s6, 128  ;;  %s717_s4 = scalar_lea.hbm %s1038_s3, 256 }
 0x154   : > { %p714_p9 = scmp.ne.s32.totalorder %s986_s6, %s713_s19  ;;  %p718_p7 = scmp.lt.u32.totalorder %s986_s6, %s1038_s3 }
 0x155   : > { %p719_p3 = scmp.lt.u32.totalorder %s717_s4, %s713_s19  ;;  %p721_p4 = scmp.lt.u32.totalorder %s713_s19, %s986_s6 }
 0x156   : > { %p715_p1 = pnand %p714_p9, %p910_p10 }
 0x157   : > { %p720_p13 = por %p719_p3, %p718_p7 }
 0x158   : > { %p716_p2 = pneg %p715_p1 }
 0x159   : > { %p722_p6 = por %p721_p4, %p720_p13 }
 0x15b   : > { %p723_p8 = pnand %p722_p6, %p716_p2 }
 0x15d   : > { %726 = shalt.err (!%p723_p8)
}
 0x15e   : > { %562 = dma.vmem_to_hbm [thread:$0]  (%p910_p10), %s988_s11, 128, %s986_s6, %s379_s26  }
 0x15f PF: > { %s405_s24 = sand.u32 1, %s765_s12   ;;  %p1056_p12 = scmp.ne.s32.totalorder %s1046_s23, 0 }
 0x160   : > { %p1057_p11 = scmp.ge.s32.totalorder %s785_s17, 2  ;;  %s406_s9 = scalar_lea.sflag [#allocation5], %s405_s24 }
 0x162   : > { %p573_p0 = pnand %p1057_p11, %p1056_p12 }
 0x164   : > { %760 = dma.done.wait (!%p573_p0), %s406_s9, 128  }
 0x165   : > { %762 = vsyncadd (!%p573_p0), %s406_s9, 4294967168  ;;  %s20_s17 = sadd.s32 1, %s785_s17   ;;  %s1058_s12 = smov %s769_s13 }
 0x166   : > { %p17_p5 = scmp.ge.s32.totalorder %s20_s17, 4   ;;  %s1059_s13 = smov %s773_s14 }
 0x167   : > { %s1060_s14 = smov %s919_s5  ;;  %s1061_s15 = smov %s781_s16 }
 0x168   : > { %s1062_s16 = smov %s1064_s28  ;;  %19 = sbr.rel (!%p17_p5) target bundleno = 7 (0x7), region = 93 }
 0x16f   :  { %411 = vsyncpa [#allocation4], 1 }
 0x170   :  { %413 = vsyncpa [#allocation4 + $0x1], 1 }
 0x171   :  { %414 = vsyncpa [#allocation7], 1 }
 0x172   :  { %415 = vsyncpa [#allocation5], 1 }
 0x173   :  { %417 = vsyncpa [#allocation5 + $0x1], 1 }

</bundles_post_ra>
